<compile_context>
chip_gen: v5e
topology: v5e:2x2
jax: 0.10.0
libtpu: 0.0.40
codegen_flags: <defaults>
</compile_context>

<pallas_src>
import functools
import math

import jax
import jax.numpy as jnp
from jax import lax
from jax.experimental import pallas as pl
from jax.experimental.pallas import tpu as pltpu

_NEG_BIG = -1e30  # finite stand-in for -inf in the masked fill


def _attn_kernel(valid_len_ref, q_ref, k_ref, v_ref, o_ref, *, scale, mask_keys):
    b = pl.program_id(0)

    # Fold 1/sqrt(d) into Q (cheaper than scaling the (tq, Sk) score tile).
    q = q_ref[...].astype(jnp.float32) * scale          # (tq, D)
    k = k_ref[...]                                       # (Sk, D)
    v = v_ref[...]                                       # (Sk, Dv)

    # scores = Q_scaled @ K^T — contract feature dims, no materialized transpose.
    scores = lax.dot_general(
        q, k, (((1,), (1,)), ((), ())),
        preferred_element_type=jnp.float32)              # (tq, Sk)

    if mask_keys:
        vlen = valid_len_ref[b]                          # scalar int32 from SMEM
        key_ids = lax.broadcasted_iota(jnp.int32, scores.shape, dimension=1)
        scores = jnp.where(key_ids < vlen, scores, _NEG_BIG)

    # Numerically-stable softmax over the key axis (single exp pass).
    m = jnp.max(scores, axis=-1, keepdims=True)
    e = jnp.exp(scores - m)
    denom = jnp.sum(e, axis=-1, keepdims=True)
    w = e * pl.reciprocal(denom, approx=True)            # divide on the EUP slot

    # TODO(synk): nn.Dropout is identity here (args.dropout_rate == 0.0 / eval);
    # no PRNG dropout path is implemented.
    o_ref[...] = jnp.dot(w, v, preferred_element_type=jnp.float32).astype(o_ref.dtype)


def _choose_q_tile(sq):
    """Full extent for small Sq; otherwise a sublane-aligned divisor tile."""
    if sq <= 512:
        return sq
    for t in (512, 256, 128):
        if sq % t == 0:
            return t
    return sq


def dot_product_attention(query, key, value, valid_len=None):
    """Pallas equivalent of DotProductAttention.forward(query, key, value, valid_len)."""
    B, Sq, D = query.shape
    Sk = key.shape[1]
    Dv = value.shape[-1]
    scale = 1.0 / math.sqrt(D)

    mask_keys = valid_len is not None
    if valid_len is None:
        vlen = jnp.zeros((B,), jnp.int32)                # unused placeholder
    else:
        # TODO(synk): only the canonical 1-D per-batch valid_len path of
        # masked_softmax is implemented (the reference 2-D branch is degenerate).
        vlen = jnp.asarray(valid_len, jnp.int32).reshape(B)

    tq = _choose_q_tile(Sq)
    n_q_tiles = Sq // tq

    kernel = functools.partial(_attn_kernel, scale=scale, mask_keys=mask_keys)

    grid_spec = pltpu.PrefetchScalarGridSpec(
        num_scalar_prefetch=1,                           # valid_len -> SMEM
        grid=(B, n_q_tiles),
        in_specs=[
            # Leading None squeezes the batch dim out of the kernel refs.
            pl.BlockSpec((None, tq, D), lambda b, qi, vl: (b, qi, 0)),
            pl.BlockSpec((None, Sk, D), lambda b, qi, vl: (b, 0, 0)),
            pl.BlockSpec((None, Sk, Dv), lambda b, qi, vl: (b, 0, 0)),
        ],
        out_specs=pl.BlockSpec((None, tq, Dv), lambda b, qi, vl: (b, qi, 0)),
    )

    return pl.pallas_call(
        kernel,
        out_shape=jax.ShapeDtypeStruct((B, Sq, Dv), query.dtype),
        grid_spec=grid_spec,
        compiler_params=pltpu.CompilerParams(
            dimension_semantics=("parallel", "parallel")),   # megacore sharding
    )(vlen, query, key, value)


# ----------------------------------------------------------------------------
# Plain-JAX reference (mirrors torch: bmm, masked_softmax with -inf, bmm)
# ----------------------------------------------------------------------------
def _reference(query, key, value, valid_len=None):
    d = query.shape[-1]
    scores = jnp.einsum("bqd,bkd->bqk", query, key) / math.sqrt(d)
    if valid_len is not None:
        key_ids = jnp.arange(key.shape[1])[None, None, :]
        mask = key_ids < valid_len[:, None, None]
        scores = jnp.where(mask, scores, -jnp.inf)
    w = jax.nn.softmax(scores, axis=-1)
    return jnp.einsum("bqk,bkd->bqd", w, value)


# ----------------------------------------------------------------------------
if __name__ == "__main__":
    root = jax.random.PRNGKey(0)
    kq, kk, kv = jax.random.split(root, 3)

    B, Sq, Sk, D = 2, 8, 8, 32
    q = jax.random.normal(kq, (B, Sq, D), jnp.float32)
    k = jax.random.normal(kk, (B, Sk, D), jnp.float32)
    v = jax.random.normal(kv, (B, Sk, D), jnp.float32)
    valid_len = jnp.array([5, Sk], jnp.int32)            # per-batch valid key lengths

    # masked path
    out = jax.jit(dot_product_attention)(q, k, v, valid_len)
    jax.block_until_ready(out)
    ref = _reference(q, k, v, valid_len)
    assert out.shape == (B, Sq, D)
    assert bool(jnp.all(jnp.isfinite(out)))
    assert bool(jnp.allclose(out, ref, atol=1e-2, rtol=1e-2))

    # unmasked path (valid_len=None)
    out2 = jax.jit(dot_product_attention)(q, k, v, None)
    jax.block_until_ready(out2)
    ref2 = _reference(q, k, v, None)
    assert bool(jnp.allclose(out2, ref2, atol=1e-2, rtol=1e-2))

    print("KERNEL_OK")
</pallas_src>

<mosaic_0001>
module attributes {stable_mosaic.version = 11 : i64} {
  func.func @_attn_kernel(%arg0: i32, %arg1: i32, %arg2: memref<2xi32, #tpu.memory_space<smem>>, %arg3: memref<1x8x32xf32, #tpu.memory_space<vmem>>, %arg4: memref<1x8x32xf32, #tpu.memory_space<vmem>>, %arg5: memref<1x8x32xf32, #tpu.memory_space<vmem>>, %arg6: memref<1x8x32xf32, #tpu.memory_space<vmem>>) attributes {dimension_semantics = [#tpu.dimension_semantics<parallel>, #tpu.dimension_semantics<parallel>], iteration_bounds = array<i64: 2, 1>, scalar_prefetch = 1 : i64, scratch_operands = 0 : i64, tpu.core_type = #tpu.core_type<tc>, window_params = [{transform_indices = @transform_0, window_bounds = array<i64: 1, 8, 32>}, {transform_indices = @transform_1, window_bounds = array<i64: 1, 8, 32>}, {transform_indices = @transform_2, window_bounds = array<i64: 1, 8, 32>}, {transform_indices = @transform_3, window_bounds = array<i64: 1, 8, 32>}]} {
    %c0 = arith.constant 0 : index
    %c0_0 = arith.constant 0 : index
    %c0_1 = arith.constant 0 : index
    %0 = vector.load %arg3[%c0, %c0_0, %c0_1] : memref<1x8x32xf32, #tpu.memory_space<vmem>>, vector<1x8x32xf32>
    %1 = vector.shape_cast %0 : vector<1x8x32xf32> to vector<8x32xf32>
    %cst = arith.constant 0.176776692 : f32
    %2 = vector.broadcast %cst : f32 to vector<8x32xf32>
    %3 = arith.mulf %1, %2 : vector<8x32xf32>
    %c0_2 = arith.constant 0 : index
    %c0_3 = arith.constant 0 : index
    %c0_4 = arith.constant 0 : index
    %4 = vector.load %arg4[%c0_2, %c0_3, %c0_4] : memref<1x8x32xf32, #tpu.memory_space<vmem>>, vector<1x8x32xf32>
    %5 = vector.shape_cast %4 : vector<1x8x32xf32> to vector<8x32xf32>
    %c0_5 = arith.constant 0 : index
    %c0_6 = arith.constant 0 : index
    %c0_7 = arith.constant 0 : index
    %6 = vector.load %arg5[%c0_5, %c0_6, %c0_7] : memref<1x8x32xf32, #tpu.memory_space<vmem>>, vector<1x8x32xf32>
    %7 = vector.shape_cast %6 : vector<1x8x32xf32> to vector<8x32xf32>
    %cst_8 = arith.constant dense<0.000000e+00> : vector<8x8xf32>
    %8 = tpu.matmul %3, %5, %cst_8 {dimension_numbers = #tpu.dot_dimension_numbers<[1], [1], [0], [0], [0, 0, 1, 0], [], []>} : vector<8x32xf32>, vector<8x32xf32>, vector<8x8xf32> -> vector<8x8xf32>
    %9 = arith.index_cast %arg0 : i32 to index
    %10 = memref.load %arg2[%9] : memref<2xi32, #tpu.memory_space<smem>>
    %11 = tpu.iota {dimensions = array<i32: 1>} : vector<8x8xi32>
    %12 = vector.broadcast %10 : i32 to vector<8x8xi32>
    %13 = arith.cmpi slt, %11, %12 : vector<8x8xi32>
    %cst_9 = arith.constant -1.000000e+30 : f32
    %14 = vector.broadcast %cst_9 : f32 to vector<8x8xf32>
    %15 = arith.select %13, %8, %14 : vector<8x8xi1>, vector<8x8xf32>
    %cst_10 = arith.constant dense<0xFF800000> : vector<8xf32>
    %16 = vector.multi_reduction <maximumf>, %15, %cst_10 [1] : vector<8x8xf32> to vector<8xf32>
    %17 = vector.shape_cast %16 : vector<8xf32> to vector<8x1xf32>
    %18 = vector.broadcast %17 : vector<8x1xf32> to vector<8x8xf32>
    %19 = arith.subf %15, %18 : vector<8x8xf32>
    %20 = math.exp %19 : vector<8x8xf32>
    %cst_11 = arith.constant dense<0.000000e+00> : vector<8xf32>
    %21 = vector.multi_reduction <add>, %20, %cst_11 [1] : vector<8x8xf32> to vector<8xf32>
    %22 = vector.shape_cast %21 : vector<8xf32> to vector<8x1xf32>
    %23 = tpu.reciprocal %22 {approx = true} : vector<8x1xf32> -> vector<8x1xf32>
    %24 = vector.broadcast %23 : vector<8x1xf32> to vector<8x8xf32>
    %25 = arith.mulf %20, %24 : vector<8x8xf32>
    %cst_12 = arith.constant dense<0.000000e+00> : vector<8x32xf32>
    %26 = tpu.matmul %25, %7, %cst_12 {dimension_numbers = #tpu.dot_dimension_numbers<[1], [0], [0], [1], [0, 0, 1, 1], [], []>} : vector<8x8xf32>, vector<8x32xf32>, vector<8x32xf32> -> vector<8x32xf32>
    %c0_13 = arith.constant 0 : index
    %c0_14 = arith.constant 0 : index
    %c0_15 = arith.constant 0 : index
    %27 = vector.load %arg6[%c0_13, %c0_14, %c0_15] : memref<1x8x32xf32, #tpu.memory_space<vmem>>, vector<1x8x32xf32>
    %28 = vector.shape_cast %27 : vector<1x8x32xf32> to vector<8x32xf32>
    %29 = vector.shape_cast %26 : vector<8x32xf32> to vector<1x8x32xf32>
    tpu.vector_store %arg6[%c0_13, %c0_14, %c0_15], %29 {strides = array<i32>} : memref<1x8x32xf32, #tpu.memory_space<vmem>>, vector<1x8x32xf32>,
    return
  }
  func.func @transform_0(%arg0: i32, %arg1: i32, %arg2: memref<2xi32, #tpu.memory_space<smem>>) -> (i32, i32, i32) {
    %c0_i32 = arith.constant 0 : i32
    %c0_i32_0 = arith.constant 0 : i32
    return %arg0, %arg1, %c0_i32 : i32, i32, i32
  }
  func.func @transform_1(%arg0: i32, %arg1: i32, %arg2: memref<2xi32, #tpu.memory_space<smem>>) -> (i32, i32, i32) {
    %c0_i32 = arith.constant 0 : i32
    %c0_i32_0 = arith.constant 0 : i32
    %c0_i32_1 = arith.constant 0 : i32
    return %arg0, %c0_i32, %c0_i32_0 : i32, i32, i32
  }
  func.func @transform_2(%arg0: i32, %arg1: i32, %arg2: memref<2xi32, #tpu.memory_space<smem>>) -> (i32, i32, i32) {
    %c0_i32 = arith.constant 0 : i32
    %c0_i32_0 = arith.constant 0 : i32
    %c0_i32_1 = arith.constant 0 : i32
    return %arg0, %c0_i32, %c0_i32_0 : i32, i32, i32
  }
  func.func @transform_3(%arg0: i32, %arg1: i32, %arg2: memref<2xi32, #tpu.memory_space<smem>>) -> (i32, i32, i32) {
    %c0_i32 = arith.constant 0 : i32
    %c0_i32_0 = arith.constant 0 : i32
    return %arg0, %arg1, %c0_i32 : i32, i32, i32
  }
}

</mosaic_0001>

<bundles_post_ra>
// kernel: dot_product_attention.1
= control target key start
LH: loop header
LB: loop body
LE: loop exit
PB: predicated region body
PF: predicated region fallthrough
CT: control target
= control target key end

     0   :  { %s793_s18 = smov [#allocation3]   ;;  %s987_s0 = inlined_call_operand.vmem [shape: s32[2], index: 0, kind: input, shape index: {}]   ;;  %s988_s1 = inlined_call_operand.hbm [shape: f32[2,8,32], index: 1, kind: input, shape index: {}]   ;;  %s989_s2 = inlined_call_operand.hbm [shape: f32[2,8,32], index: 2, kind: input, shape index: {}]   ;;  %s990_s3 = inlined_call_operand.hbm [shape: f32[2,8,32], index: 3, kind: input, shape index: {}]   ;;  %s991_s4 = inlined_call_operand.hbm [shape: f32[2,8,32], index: 4, kind: output, shape index: {}]  }
   0x1   :  { %994 = sst [smem:[#allocation18_spill]] %s989_s2  ;;  %s10_s17 = sshll.u32 %s987_s0, 4  ;;  %s11_s17 = int_to_ptr.vmem [resolvable:$true] %s10_s17 }
   0x2   :  { %13 = dma.vmem_to_smem %s11_s17, 16, %s793_s18, [#allocation2] }
   0x3   :  { %755 = dma.done.wait [#allocation2], 16 }
   0x4   :  { %756 = vsyncadd [#allocation2], 4294967280 }
   0x5   :  { %16 = sfence }
   0x6   :  { %17 = vsyncpa [#allocation5], 0 }
   0x7   :  { %19 = vsyncpa [#allocation5 + $0x1], 0 }
   0x8   :  { %20 = vsyncpa [#allocation8], 0 }
   0x9   :  { %22 = vsyncpa [#allocation8 + $0x1], 0 }
   0xa   :  { %23 = vsyncpa [#allocation6], 0 }
   0xb   :  { %25 = vsyncpa [#allocation6 + $0x1], 0  ;;  %s822_s19 = smov 0   ;;  %s824_s20 = smov 0  }
   0xc   :  { %s826_s21 = smov 0   ;;  %s828_s22 = smov 0  }
   0xd   :  { %s830_s0 = smov 0   ;;  %s832_s23 = smov 0  }
   0xe LB: > { %995 = sst [smem:[#allocation15_spill]] %s787_s0  ;;  %s853_s24 = sadd.s32 4294967295, %s791_s23   ;;  %s791_s23 = sphi %s832_s23, %s31_s23   ;;  %s787_s0 = sphi %s830_s0, %s1011_s0   ;;  %s783_s22 = sphi %s828_s22, %s1006_s22   ;;  %s779_s21 = sphi %s826_s21, %s1010_s21   ;;  %s775_s20 = sphi %s824_s20, %s1009_s20   ;;  %s771_s19 = sphi %s822_s19, %s1008_s19  }
   0xf   : > { %s503_s25 = sadd.s32 4294967294, %s791_s23   ;;  %s43_s26 = sadd.s32 1, %s787_s0 }
  0x10   : > { %s52_s27 = sadd.s32 1, %s779_s21  ;;  %p45_p0 = scmp.ge.s32.totalorder %s43_s26, 2 }
  0x11   : > { %p59_p1 = scmp.ne.s32.totalorder %s779_s21, %s775_s20  ;;  %p60_p2 = scmp.eq.s32.totalorder %s791_s23, 0 }
  0x12   : > { %p65_p3 = scmp.ne.s32.totalorder %s775_s20, %s771_s19  ;;  %s1013_s26 = smov (%p45_p0, %s43_s26), 0 }
  0x13   : > { %996 = sst [smem:[#allocation16_spill]] %s1013_s26  ;;  %p865_p4 = por %p60_p2, %p59_p1 }
  0x14   : > { %p66_p5 = scmp.eq.s32.totalorder %s853_s24, 0  ;;  %s47_s29 = ssub.s32 %s787_s0, %s1013_s26 }
  0x15   : > { %p143_p6 = scmp.eq.s32.totalorder %s853_s24, 1  ;;  %p50_p7 = scmp.eq.s32.totalorder %s47_s29, 0 }
  0x16   : > { %p873_p8 = por %p66_p5, %p65_p3  ;;  %p149_p10 = scmp.eq.s32.totalorder %s503_s25, 1 }
  0x17   : > { %p877_p9 = por %p143_p6, %p59_p1  ;;  %p505_p12 = scmp.ge.s32.totalorder %s791_s23, 2 }
  0x18   : > { %s882_s6 = scalar_select %p50_p7, %s779_s21, %s52_s27  }
  0x19   : > { %p884_p11 = por %p149_p10, %p65_p3  ;;  %p546_p13 = scmp.lt.s32.totalorder %s791_s23, 2 }
  0x1a   : > { %1000 = sst [smem:[#allocation17_spill]] %s882_s6  ;;  %s169_s8 = sand.u32 1, %s779_s21  }
  0x1b   : > { %s506_s9 = sshll.u32 %s169_s8, 3  ;;  %s507_s10 = sshll.u32 %s787_s0, 3 }
  0x1c   : > { %p894_p0 = pnand %p546_p13, %p865_p4  ;;  %s189_s12 = sand.u32 1, %s791_s23  }
  0x1d   : > { %s1003_s2 = sld [smem:[#allocation18_spill]]  ;;  %s193_s17 = scalar_lea.vmem [#allocation7], %s506_s9 }
  0x1e   : > { %s201_s18 = sshll.u32 %s193_s17, 4  ;;  %s190_s25 = scalar_lea.sflag [#allocation8], %s189_s12  ;;  %s202_s18 = int_to_ptr.vmem [resolvable:$true] %s201_s18 }
  0x1f   : > { %p512_p1 = scmp.ge.s32.totalorder %s791_s23, 1  ;;  %p225_p2 = scmp.lt.s32.totalorder %s791_s23, 3 }
  0x20   : > { %s178_s13 = scalar_lea.hbm %s988_s1, %s507_s10  ;;  %s170_s17 = scalar_lea.sflag [#allocation5], %s169_s8 }
  0x21   : > { %p906_p3 = pnand %p512_p1, %p225_p2  ;;  %s180_s14 = sshll.u32 %s178_s13, 4  ;;  %s181_s14 = int_to_ptr.hbm [resolvable:$true] %s180_s14 }
  0x22   : > { %s212_s0 = scalar_lea.vmem [#allocation9], %s506_s9  ;;  %s923_s28 = sand.u32 (!%p906_p3), 1, %s775_s20  }
  0x23   : > { %s197_s15 = scalar_lea.hbm %s1003_s2, %s507_s10  ;;  %s220_s6 = sshll.u32 %s212_s0, 4  ;;  %s221_s6 = int_to_ptr.vmem [resolvable:$true] %s220_s6 }
  0x24   : > { %s199_s16 = sshll.u32 %s197_s15, 4  ;;  %s173_s15 = scalar_lea.vmem [#allocation4], %s506_s9  ;;  %s200_s16 = int_to_ptr.hbm [resolvable:$true] %s199_s16 }
  0x25   : > { %538 = dma.hbm_to_vmem [thread:$0]  (!%p894_p0), %s200_s16, 128, %s202_s18, %s190_s25  }
  0x26   : > { %s182_s2 = sshll.u32 %s173_s15, 4  ;;  %s216_s18 = scalar_lea.hbm %s990_s3, %s507_s10  ;;  %s183_s2 = int_to_ptr.vmem [resolvable:$true] %s182_s2 }
  0x27   : > { %535 = dma.hbm_to_vmem [thread:$0]  (!%p894_p0), %s181_s14, 128, %s183_s2, %s170_s17  }
  0x28   : > { %s218_s26 = sshll.u32 %s216_s18, 4  ;;  %229 = sbr.rel (%p906_p3) target bundleno = 563 (0x233), region = 32  ;;  %s219_s26 = int_to_ptr.hbm [resolvable:$true] %s218_s26 }
  0x29   : > { %541 = dma.hbm_to_vmem [thread:$0]  (!%p894_p0), %s219_s26, 128, %s221_s6, %s190_s25  }
  0x2a   : > { %s926_s2 = sshll.u32 (!%p906_p3), %s923_s28, 3  ;;  %s232_s8 = scalar_lea.sflag (!%p906_p3), [#allocation5], %s923_s28 }
  0x2b   : > { %s235_s10 = scalar_lea.vmem (!%p906_p3), [#allocation4], %s926_s2 }
  0x2d   : > { %758 = dma.done.wait (%p873_p8), %s232_s8, 128  }
  0x2e   : > { %760 = vsyncadd (%p873_p8), %s232_s8, 4294967168  ;;  %s241_s0 = sand.u32 1, %s853_s24   ;;  %s245_s6 = scalar_lea.vmem [#allocation7], %s926_s2 }
  0x2f   : > { %s242_s26 = scalar_lea.sflag [#allocation8], %s241_s0 }
  0x30   : > { %762 = dma.done.wait (%p873_p8), %s242_s26, 256  }
  0x31   : > { %764 = vsyncadd (%p873_p8), %s242_s26, 4294967040  ;;  %vm293_vm0 = vcmask 261120   ;;  %v291_v0 = vld [vmem:[%s245_s6] sm:$0xff]  ;;  %v289_v1 = vld [vmem:[%s235_s10] sm:$0xff]  ;;  %s320_s9 = sld [smem:[#allocation3 + %s783_s22]]  ;;  %v321_v3 = vlaneseq  ;;  %vm326_vm2 = vcmask 64512  }
  0x32   : > { %517 = vmatpush.xpose.msk.msra.mxu0 %vm293_vm0, %v291_v0  ;;  %v290_v2 = vmul.f32 0.17677669, %v289_v1  ;;  %s255_s24 = scalar_lea.vmem [#allocation9], %s926_s2  ;;  %s521_s30 = sshll.u32 %s783_s22, 3 }
  0x33   : > { %v322_v4 = vand.u32 127, %v321_v3  ;;  %v292_v14 = vld [vmem:[%s255_s24] sm:$0xff]  ;;  %s374_s27 = scalar_lea.hbm %s991_s4, %s521_s30  ;;  %s288_s29 = scalar_lea.vmem [#allocation10], %s926_s2 }
  0x34   : > { %356 = vmatpush.msra.mxu1 %v292_v14  ;;  %s376_s13 = sshll.u32 %s288_s29, 4  ;;  %s378_s14 = sshll.u32 %s374_s27, 4  ;;  %s377_s13 = int_to_ptr.vmem [resolvable:$true] %s376_s13  ;;  %s379_s14 = int_to_ptr.hbm [resolvable:$true] %s378_s14 }
  0x35   : > { %518 = vmatmul.msk.f32.vlgmr.msra.gmra.mxu0 %vm293_vm0, %v290_v2  ;;  %s363_s15 = scalar_lea.sflag [#allocation6], %s923_s28  ;;  %s717_s17 = sshra.s32 %s379_s14, 4  ;;  %s718_s17 = int_to_ptr.hbm [resolvable:$true] %s717_s17 }
  0x36   : > { %s719_s12 = scalar_lea.hbm %s718_s17, 8  ;;  %s723_s18 = scalar_lea.hbm %s991_s4, 16 }
  0x37   : > { %v323_v5 = vstv %s320_s9  ;;  %p720_p4 = scmp.ne.s32.totalorder %s718_s17, %s719_s12  ;;  %p724_p7 = scmp.lt.s32.totalorder %s718_s17, %s991_s4 }
  0x38   : > { %vm324_vm1 = vcmp.lt.s32.totalorder %v322_v4, %v323_v5  ;;  %p725_p8 = scmp.lt.s32.totalorder %s723_s18, %s719_s12 }
  0x39   : > { %p721_p5 = pnand %p720_p4, %p877_p9 }
  0x3a   : > { %p726_p10 = por %p725_p8, %p724_p7 }
  0x3b   : > { %p722_p6 = pneg %p721_p5 }
  0x3d   : > { %p727_p13 = pnand %p726_p10, %p722_p6 }
  0xb2   : > { %v317_v6 = vpop.f32.mrf.mxu0 }
  0xb3   : > { %v325_v7 = vsel %vm324_vm1, %v317_v6, -1e+30 }
  0xb4   : > { %v327_v8 = vsel %vm326_vm2, %v325_v7, -inf }
  0xb5   : > { %328 = vmax.xlane.f32.xlu0 %v327_v8 }
 0x128   : > { %v329_v9 = vpop.xlane.xlu0 %328 }
 0x129   : > { %v330_v10 = vsub.f32 %v325_v7, %v329_v9 }
 0x12b   : > { %v331_v11 = vmul.f32 1.442695, %v330_v10 }
 0x12d   : > { %597 = vpow2.f32 %v331_v11 }
 0x133   : > { %v598_v12 = vpop.eup %597 }
 0x134   : > { %v333_v13 = vsel %vm326_vm2, %v598_v12, 0.0 }
 0x135   : > { %334 = vadd.xlane.f32.xlu0 %v333_v13 }
 0x1a8   : > { %v335_v15 = vpop.xlane.xlu0 %334 }
 0x1a9   : > { %599 = vrcp.f32 %v335_v15 }
 0x1af   : > { %v600_v16 = vpop.eup %599 }
 0x1b0   : > { %v337_v17 = vmul.f32 %v600_v16, %v598_v12 }
 0x1b2   : > { %519 = vmatmul.msk.f32.vlgmr.msra.gmra.mxu1 %vm326_vm2, %v337_v17 }
 0x22f   : > { %v358_v18 = vpop.f32.mrf.mxu1 }
 0x230   : > { %361 = vst.msk [vmem:[%s288_s29] sm:$0xff] %vm293_vm0, %v358_v18 }
 0x231   : > { %730 = shalt.err (!%p727_p13)
}
 0x232   : > { %530 = dma.vmem_to_hbm [thread:$0]  (%p877_p9), %s377_s13, 128, %s379_s14, %s363_s15  }
 0x233 PF: > { %s390_s28 = sand.u32 1, %s771_s19   ;;  %p543_p0 = pnand %p505_p12, %p884_p11 }
 0x234   : > { %s391_s10 = scalar_lea.sflag [#allocation6], %s390_s28 }
 0x235   : > { %p544_p1 = pneg %p543_p0 }
 0x237   : > { %766 = dma.done.wait (%p544_p1), %s391_s10, 128  }
 0x238   : > { %768 = vsyncadd (%p544_p1), %s391_s10, 4294967168  ;;  %s31_s23 = sadd.s32 1, %s791_s23   ;;  %s1005_s0 = sld [smem:[#allocation17_spill]] }
 0x239   : > { %p28_p2 = scmp.ge.s32.totalorder %s31_s23, 4   ;;  %s1006_s22 = sld [smem:[#allocation15_spill]] }
 0x23a   : > { %s1007_s5 = sld [smem:[#allocation16_spill]]  ;;  %s1008_s19 = smov %s775_s20 }
 0x23b   : > { %s1009_s20 = smov %s779_s21 }
 0x23c   :  { %30 = sbr.rel (!%p28_p2) target bundleno = 14 (0xe), region = 101 }
 0x23e   : > { %s1010_s21 = smov %s1005_s0 }
 0x240   : > { %s1011_s0 = smov %s1007_s5 }
 0x241   :  { %397 = vsyncpa [#allocation5], 1 }
 0x242   :  { %399 = vsyncpa [#allocation5 + $0x1], 1 }
 0x243   :  { %400 = vsyncpa [#allocation8], 1 }
 0x244   :  { %402 = vsyncpa [#allocation8 + $0x1], 1 }
 0x245   :  { %403 = vsyncpa [#allocation6], 1 }
 0x246   :  { %405 = vsyncpa [#allocation6 + $0x1], 1 }

</bundles_post_ra>
